<compile_context>
chip_gen: v5e
topology: v5e:2x2
jax: 0.10.0
libtpu: 0.0.40
codegen_flags: <defaults>
</compile_context>

<pallas_src>
import functools

import jax
import jax.numpy as jnp
from jax import lax
from jax.experimental import pallas as pl
from jax.experimental.pallas import tpu as pltpu


# ---------------------------------------------------------------------------
# Conditioning MLP:  SiLU -> Linear(time_dim + class_dim, 2 * dim_out)
# ---------------------------------------------------------------------------
def _mlp_kernel(c_ref, w_ref, b_ref, o_ref):
    c = c_ref[...].astype(jnp.float32)
    h = c * jax.nn.sigmoid(c)                                   # SiLU
    y = jnp.dot(h, w_ref[...].astype(jnp.float32),
                preferred_element_type=jnp.float32)
    o_ref[...] = (y + b_ref[...].astype(jnp.float32)).astype(o_ref.dtype)


def mlp_forward(cond, w, b):
    B, dc = cond.shape
    d2 = w.shape[1]
    return pl.pallas_call(
        _mlp_kernel,
        out_shape=jax.ShapeDtypeStruct((B, d2), jnp.float32),
        grid=(1,),
        in_specs=[
            pl.BlockSpec((B, dc), lambda i: (0, 0)),
            pl.BlockSpec((dc, d2), lambda i: (0, 0)),
            pl.BlockSpec((1, d2), lambda i: (0, 0)),
        ],
        out_specs=pl.BlockSpec((B, d2), lambda i: (0, 0)),
    )(cond, w, b)


# ---------------------------------------------------------------------------
# Fused Block kernel: WS-Conv1d(k=3, p=1) + GroupNorm + scale/shift + SiLU
# (+ fused residual add / 1x1 residual conv).  One grid step = one
# (batch, group) pair.
# ---------------------------------------------------------------------------
def _block_kernel(*refs, eps_ws, eps_gn, has_ss, res_mode):
    it = iter(refs)
    x_ref = next(it)       # (1, C_in, L + 2)  zero-padded along length (halo)
    w_ref = next(it)       # (1, 3, Cg, C_in)  raw conv weight for this group
    b_ref = next(it)       # (1, Cg, 1)        conv bias
    gam_ref = next(it)     # (1, Cg, 1)        GroupNorm weight
    bet_ref = next(it)     # (1, Cg, 1)        GroupNorm bias
    if has_ss:
        sc_ref = next(it)  # (1, 1, Cg, 1)     scale (from conditioning MLP)
        sh_ref = next(it)  # (1, 1, Cg, 1)     shift
    if res_mode == "identity":
        r_ref = next(it)   # (1, 1, Cg, L)     residual slice of ResnetBlock input
    elif res_mode == "conv":
        xr_ref = next(it)  # (1, C0, L)        original ResnetBlock input
        wr_ref = next(it)  # (1, Cg, C0)       1x1 res-conv weight
        br_ref = next(it)  # (1, Cg, 1)        1x1 res-conv bias
    o_ref = next(it)       # (1, 1, Cg, L)

    L = o_ref.shape[3]

    # --- weight standardization (per out-channel, over (k, in_ch)) ----------
    w = w_ref[0].astype(jnp.float32)                            # (3, Cg, C_in)
    w_mean = jnp.mean(jnp.mean(w, axis=2, keepdims=True), axis=0, keepdims=True)
    w_ctr = w - w_mean
    w_var = jnp.mean(jnp.mean(w_ctr * w_ctr, axis=2, keepdims=True),
                     axis=0, keepdims=True)
    w = w_ctr * lax.rsqrt(w_var + eps_ws)

    # --- Conv1d(k=3, padding=1): three shifted windows -> three MXU matmuls -
    x_m1 = x_ref[0, :, pl.ds(0, L)].astype(jnp.float32)         # x[:, l-1]
    x_c = x_ref[0, :, pl.ds(1, L)].astype(jnp.float32)          # x[:, l]
    x_p1 = x_ref[0, :, pl.ds(2, L)].astype(jnp.float32)         # x[:, l+1]
    h = (jnp.dot(w[0], x_m1, preferred_element_type=jnp.float32)
         + jnp.dot(w[1], x_c, preferred_element_type=jnp.float32)
         + jnp.dot(w[2], x_p1, preferred_element_type=jnp.float32))
    h = h + b_ref[0].astype(jnp.float32)                        # (Cg, L)

    # --- GroupNorm: this block IS one group; centered temp reused -----------
    mu = jnp.mean(jnp.mean(h, axis=1, keepdims=True), axis=0, keepdims=True)
    d = h - mu
    var = jnp.mean(jnp.mean(d * d, axis=1, keepdims=True), axis=0, keepdims=True)
    hn = d * lax.rsqrt(var + eps_gn)
    hn = hn * gam_ref[0].astype(jnp.float32) + bet_ref[0].astype(jnp.float32)

    if has_ss:
        hn = (hn * (sc_ref[0, 0].astype(jnp.float32) + 1.0)
              + sh_ref[0, 0].astype(jnp.float32))

    out = hn * jax.nn.sigmoid(hn)                               # SiLU

    if res_mode == "identity":
        out = out + r_ref[0, 0].astype(jnp.float32)
    elif res_mode == "conv":
        xr = xr_ref[0].astype(jnp.float32)                      # (C0, L)
        res = jnp.dot(wr_ref[0].astype(jnp.float32), xr,
                      preferred_element_type=jnp.float32)
        out = out + res + br_ref[0].astype(jnp.float32)

    o_ref[0, 0] = out.astype(o_ref.dtype)


def block_forward(x, w, b, gamma, beta, *, groups, scale_shift=None,
                  residual=None):
    """One `Block` of the ResnetBlock (optionally with the fused residual).

    x: (B, C_in, L); w: (C_out, C_in, 3); b/gamma/beta: (C_out,)
    scale_shift: None or (scale, shift), each (B, C_out)
    residual: None | ("identity", x0) | ("conv", x0, w_res, b_res)
    """
    B, c_in, L = x.shape
    c_out = w.shape[0]
    assert c_out % groups == 0, "GroupNorm requires groups | C_out"
    cg = c_out // groups
    eps_ws = 1e-5 if x.dtype == jnp.float32 else 1e-3
    eps_gn = 1e-5

    # Halo for the k=3 convolution: one zero column on each side.
    x_pad = jnp.pad(x, ((0, 0), (0, 0), (1, 1)))

    # (C_out, C_in, 3) -> (groups, 3, Cg, C_in): per-group blocks whose last
    # two dims equal the full array dims.
    w_r = (jnp.transpose(w, (2, 0, 1))
           .reshape(3, groups, cg, c_in)
           .transpose(1, 0, 2, 3))
    b_r = b.reshape(groups, cg, 1)
    gamma_r = gamma.reshape(groups, cg, 1)
    beta_r = beta.reshape(groups, cg, 1)

    in_arrays = [x_pad, w_r, b_r, gamma_r, beta_r]
    in_specs = [
        pl.BlockSpec((1, c_in, L + 2), lambda bb, g: (bb, 0, 0)),  # resident over g
        pl.BlockSpec((1, 3, cg, c_in), lambda bb, g: (g, 0, 0, 0)),
        pl.BlockSpec((1, cg, 1), lambda bb, g: (g, 0, 0)),
        pl.BlockSpec((1, cg, 1), lambda bb, g: (g, 0, 0)),
        pl.BlockSpec((1, cg, 1), lambda bb, g: (g, 0, 0)),
    ]

    has_ss = scale_shift is not None
    if has_ss:
        scale, shift = scale_shift
        in_arrays += [scale.reshape(B, groups, cg, 1),
                      shift.reshape(B, groups, cg, 1)]
        ss_spec = pl.BlockSpec((1, 1, cg, 1), lambda bb, g: (bb, g, 0, 0))
        in_specs += [ss_spec, ss_spec]

    res_mode = "none"
    if residual is not None:
        if residual[0] == "identity":
            res_mode = "identity"
            x0 = residual[1]
            in_arrays += [x0.reshape(B, groups, cg, L)]
            in_specs += [pl.BlockSpec((1, 1, cg, L), lambda bb, g: (bb, g, 0, 0))]
        else:
            res_mode = "conv"
            _, x0, w_res, b_res = residual
            c0 = x0.shape[1]
            in_arrays += [x0,
                          w_res.reshape(groups, cg, c0),
                          b_res.reshape(groups, cg, 1)]
            in_specs += [
                pl.BlockSpec((1, c0, L), lambda bb, g: (bb, 0, 0)),
                pl.BlockSpec((1, cg, c0), lambda bb, g: (g, 0, 0)),
                pl.BlockSpec((1, cg, 1), lambda bb, g: (g, 0, 0)),
            ]

    kernel = functools.partial(_block_kernel, eps_ws=eps_ws, eps_gn=eps_gn,
                               has_ss=has_ss, res_mode=res_mode)
    out = pl.pallas_call(
        kernel,
        out_shape=jax.ShapeDtypeStruct((B, groups, cg, L), x.dtype),
        grid=(B, groups),
        in_specs=in_specs,
        out_specs=pl.BlockSpec((1, 1, cg, L), lambda bb, g: (bb, g, 0, 0)),
        compiler_params=pltpu.CompilerParams(
            dimension_semantics=("parallel", "parallel")),
    )(*in_arrays)
    return out.reshape(B, c_out, L)


# ---------------------------------------------------------------------------
# ResnetBlock forward (Pallas path)
# ---------------------------------------------------------------------------
def resnet_block_forward(params, x, time_emb=None, class_emb=None):
    groups = params["groups"]

    scale_shift = None
    if params["mlp"] is not None and (time_emb is not None or class_emb is not None):
        cond = jnp.concatenate(
            [e for e in (time_emb, class_emb) if e is not None], axis=-1)
        w_mlp, b_mlp = params["mlp"]
        y = mlp_forward(cond, w_mlp, b_mlp)            # (B, 2*dim_out)
        d = y.shape[-1] // 2
        scale_shift = (y[:, :d], y[:, d:])             # chunk(2, dim=1)

    w1, b1, g1, be1 = params["block1"]
    h = block_forward(x, w1, b1, g1, be1, groups=groups, scale_shift=scale_shift)

    if params["res_conv"] is not None:
        wr, br = params["res_conv"]
        residual = ("conv", x, wr, br)
    else:
        residual = ("identity", x)

    w2, b2, g2, be2 = params["block2"]
    return block_forward(h, w2, b2, g2, be2, groups=groups, residual=residual)


# ---------------------------------------------------------------------------
# Pure-JAX reference (mirrors the PyTorch module)
# ---------------------------------------------------------------------------
def _silu(v):
    return v * jax.nn.sigmoid(v)


def _ws_conv1d_ref(x, w, b, eps):
    mean = jnp.mean(w, axis=(1, 2), keepdims=True)
    var = jnp.mean((w - mean) ** 2, axis=(1, 2), keepdims=True)
    wn = (w - mean) * lax.rsqrt(var + eps)
    B, C, L = x.shape
    xp = jnp.pad(x, ((0, 0), (0, 0), (1, 1)))
    out = jnp.zeros((B, wn.shape[0], L), jnp.float32)
    for k in range(3):
        out = out + jnp.einsum("oi,bil->bol", wn[:, :, k], xp[:, :, k:k + L],
                               precision=lax.Precision.HIGHEST)
    return out + b.reshape(1, -1, 1)


def _group_norm_ref(x, gamma, beta, groups, eps=1e-5):
    B, C, L = x.shape
    xg = x.reshape(B, groups, C // groups, L)
    mu = jnp.mean(xg, axis=(2, 3), keepdims=True)
    var = jnp.mean((xg - mu) ** 2, axis=(2, 3), keepdims=True)
    xn = ((xg - mu) * lax.rsqrt(var + eps)).reshape(B, C, L)
    return xn * gamma.reshape(1, -1, 1) + beta.reshape(1, -1, 1)


def _block_ref(x, w, b, gamma, beta, groups, scale_shift=None):
    eps = 1e-5 if x.dtype == jnp.float32 else 1e-3
    h = _ws_conv1d_ref(x, w, b, eps)
    h = _group_norm_ref(h, gamma, beta, groups)
    if scale_shift is not None:
        sc, sh = scale_shift
        h = h * (sc[:, :, None] + 1.0) + sh[:, :, None]
    return _silu(h)


def resnet_block_reference(params, x, time_emb=None, class_emb=None):
    groups = params["groups"]
    scale_shift = None
    if params["mlp"] is not None and (time_emb is not None or class_emb is not None):
        cond = jnp.concatenate(
            [e for e in (time_emb, class_emb) if e is not None], axis=-1)
        w_mlp, b_mlp = params["mlp"]
        y = jnp.dot(_silu(cond), w_mlp, precision=lax.Precision.HIGHEST) + b_mlp
        d = y.shape[-1] // 2
        scale_shift = (y[:, :d], y[:, d:])
    w1, b1, g1, be1 = params["block1"]
    h = _block_ref(x, w1, b1, g1, be1, groups, scale_shift=scale_shift)
    w2, b2, g2, be2 = params["block2"]
    h2 = _block_ref(h, w2, b2, g2, be2, groups)
    if params["res_conv"] is not None:
        wr, br = params["res_conv"]
        res = jnp.einsum("oi,bil->bol", wr, x,
                         precision=lax.Precision.HIGHEST) + br.reshape(1, -1, 1)
    else:
        res = x
    return h2 + res


# ---------------------------------------------------------------------------
# Deterministic parameter init
# ---------------------------------------------------------------------------
def init_params(key, dim, dim_out, groups, time_emb_dim=None, classes_emb_dim=None):
    ks = jax.random.split(key, 12)
    s = 0.2
    p = {"groups": groups}
    p["block1"] = (
        s * jax.random.normal(ks[0], (dim_out, dim, 3), jnp.float32),
        s * jax.random.normal(ks[1], (dim_out,), jnp.float32),
        1.0 + 0.1 * jax.random.normal(ks[2], (dim_out,), jnp.float32),
        0.1 * jax.random.normal(ks[3], (dim_out,), jnp.float32),
    )
    p["block2"] = (
        s * jax.random.normal(ks[4], (dim_out, dim_out, 3), jnp.float32),
        s * jax.random.normal(ks[5], (dim_out,), jnp.float32),
        1.0 + 0.1 * jax.random.normal(ks[6], (dim_out,), jnp.float32),
        0.1 * jax.random.normal(ks[7], (dim_out,), jnp.float32),
    )
    if time_emb_dim is not None or classes_emb_dim is not None:
        d_c = int(time_emb_dim or 0) + int(classes_emb_dim or 0)
        p["mlp"] = (
            s * jax.random.normal(ks[8], (d_c, 2 * dim_out), jnp.float32),
            s * jax.random.normal(ks[9], (1, 2 * dim_out), jnp.float32),
        )
    else:
        p["mlp"] = None
    if dim != dim_out:
        p["res_conv"] = (
            s * jax.random.normal(ks[10], (dim_out, dim), jnp.float32),
            s * jax.random.normal(ks[11], (dim_out,), jnp.float32),
        )
    else:
        p["res_conv"] = None
    return p


if __name__ == "__main__":
    key = jax.random.PRNGKey(0)
    keys = jax.random.split(key, 8)

    # --- config 1: dim != dim_out (1x1 res-conv path), with conditioning ----
    B, dim, dim_out, L, groups = 2, 4, 32, 16, 8
    t_dim, c_dim = 8, 8
    x = jax.random.normal(keys[0], (B, dim, L), dtype=jnp.float32)
    time_emb = jax.random.normal(keys[1], (B, t_dim), dtype=jnp.float32)
    class_emb = jax.random.normal(keys[2], (B, c_dim), dtype=jnp.float32)
    params = init_params(keys[3], dim, dim_out, groups, t_dim, c_dim)

    out = resnet_block_forward(params, x, time_emb, class_emb)
    jax.block_until_ready(out)
    ref = resnet_block_reference(params, x, time_emb, class_emb)
    assert out.shape == (B, dim_out, L)
    assert jnp.allclose(out, ref, atol=2e-3, rtol=2e-3), \
        float(jnp.max(jnp.abs(out - ref)))

    # --- config 2: dim == dim_out (identity residual), no conditioning ------
    dim2 = 32
    x2 = jax.random.normal(keys[4], (B, dim2, L), dtype=jnp.float32)
    params2 = init_params(keys[5], dim2, dim2, groups, None, None)
    out2 = resnet_block_forward(params2, x2)
    jax.block_until_ready(out2)
    ref2 = resnet_block_reference(params2, x2)
    assert out2.shape == (B, dim2, L)
    assert jnp.allclose(out2, ref2, atol=2e-3, rtol=2e-3), \
        float(jnp.max(jnp.abs(out2 - ref2)))

    print("KERNEL_OK")
</pallas_src>

<mosaic_0001>
module attributes {stable_mosaic.version = 11 : i64} {
  func.func @_mlp_kernel(%arg0: i32, %arg1: memref<2x16xf32, #tpu.memory_space<vmem>>, %arg2: memref<16x64xf32, #tpu.memory_space<vmem>>, %arg3: memref<1x64xf32, #tpu.memory_space<vmem>>, %arg4: memref<2x64xf32, #tpu.memory_space<vmem>>) attributes {dimension_semantics = [#tpu.dimension_semantics<arbitrary>], iteration_bounds = array<i64: 1>, scalar_prefetch = 0 : i64, scratch_operands = 0 : i64, tpu.core_type = #tpu.core_type<tc>, window_params = [{pipeline_mode = #tpu.pipeline_mode<synchronous>, transform_indices = @transform_0, window_bounds = array<i64: 2, 16>}, {pipeline_mode = #tpu.pipeline_mode<synchronous>, transform_indices = @transform_1, window_bounds = array<i64: 16, 64>}, {pipeline_mode = #tpu.pipeline_mode<synchronous>, transform_indices = @transform_2, window_bounds = array<i64: 1, 64>}, {pipeline_mode = #tpu.pipeline_mode<synchronous>, transform_indices = @transform_3, window_bounds = array<i64: 2, 64>}]} {
    %c0 = arith.constant 0 : index
    %c0_0 = arith.constant 0 : index
    %0 = vector.load %arg1[%c0, %c0_0] : memref<2x16xf32, #tpu.memory_space<vmem>>, vector<2x16xf32>
    %1 = arith.negf %0 : vector<2x16xf32>
    %2 = math.exp %1 : vector<2x16xf32>
    %cst = arith.constant 1.000000e+00 : f32
    %3 = vector.broadcast %cst : f32 to vector<2x16xf32>
    %4 = arith.addf %3, %2 : vector<2x16xf32>
    %5 = arith.divf %3, %4 : vector<2x16xf32>
    %6 = arith.mulf %0, %5 : vector<2x16xf32>
    %c0_1 = arith.constant 0 : index
    %c0_2 = arith.constant 0 : index
    %7 = vector.load %arg2[%c0_1, %c0_2] : memref<16x64xf32, #tpu.memory_space<vmem>>, vector<16x64xf32>
    %cst_3 = arith.constant dense<0.000000e+00> : vector<2x64xf32>
    %8 = tpu.matmul %6, %7, %cst_3 {dimension_numbers = #tpu.dot_dimension_numbers<[1], [0], [0], [1], [0, 0, 1, 1], [], []>} : vector<2x16xf32>, vector<16x64xf32>, vector<2x64xf32> -> vector<2x64xf32>
    %c0_4 = arith.constant 0 : index
    %c0_5 = arith.constant 0 : index
    %9 = vector.load %arg3[%c0_4, %c0_5] : memref<1x64xf32, #tpu.memory_space<vmem>>, vector<1x64xf32>
    %10 = vector.broadcast %9 : vector<1x64xf32> to vector<2x64xf32>
    %11 = arith.addf %8, %10 : vector<2x64xf32>
    %c0_6 = arith.constant 0 : index
    %c0_7 = arith.constant 0 : index
    %12 = vector.load %arg4[%c0_6, %c0_7] : memref<2x64xf32, #tpu.memory_space<vmem>>, vector<2x64xf32>
    tpu.vector_store %arg4[%c0_6, %c0_7], %11 {strides = array<i32>} : memref<2x64xf32, #tpu.memory_space<vmem>>, vector<2x64xf32>,
    return
  }
  func.func @transform_0(%arg0: i32) -> (i32, i32) {
    %c0_i32 = arith.constant 0 : i32
    %c0_i32_0 = arith.constant 0 : i32
    %c0_i32_1 = arith.constant 0 : i32
    return %c0_i32, %c0_i32_0 : i32, i32
  }
  func.func @transform_1(%arg0: i32) -> (i32, i32) {
    %c0_i32 = arith.constant 0 : i32
    %c0_i32_0 = arith.constant 0 : i32
    %c0_i32_1 = arith.constant 0 : i32
    return %c0_i32, %c0_i32_0 : i32, i32
  }
  func.func @transform_2(%arg0: i32) -> (i32, i32) {
    %c0_i32 = arith.constant 0 : i32
    %c0_i32_0 = arith.constant 0 : i32
    %c0_i32_1 = arith.constant 0 : i32
    return %c0_i32, %c0_i32_0 : i32, i32
  }
  func.func @transform_3(%arg0: i32) -> (i32, i32) {
    %c0_i32 = arith.constant 0 : i32
    %c0_i32_0 = arith.constant 0 : i32
    %c0_i32_1 = arith.constant 0 : i32
    return %c0_i32, %c0_i32_0 : i32, i32
  }
}

</mosaic_0001>

<bundles_post_ra>
// kernel: tpu_custom_call.1
= control target key start
LH: loop header
LB: loop body
LE: loop exit
PB: predicated region body
PF: predicated region fallthrough
CT: control target
= control target key end

     0   :  { %8 = vsyncpa [#allocation3], 0  ;;  %s243_s0 = inlined_call_operand.hbm [shape: f32[2,16], index: 0, kind: input, shape index: {}]   ;;  %s244_s1 = inlined_call_operand.hbm [shape: f32[16,64], index: 1, kind: input, shape index: {}]   ;;  %s245_s2 = inlined_call_operand.vmem [shape: f32[1,64], index: 2, kind: input, shape index: {}]   ;;  %s246_s3 = inlined_call_operand.hbm [shape: f32[2,64], index: 3, kind: output, shape index: {}]  }
   0x1   :  { %9 = vsyncpa [#allocation6], 0 }
   0x2   :  { %10 = vsyncpa [#allocation4], 0  ;;  %s16_s14 = sshll.u32 %s243_s0, 4  ;;  %s206_s15 = smov [#allocation2]   ;;  %s17_s14 = int_to_ptr.hbm [resolvable:$true] %s16_s14 }
   0x3   :  { %s18_s16 = sshll.u32 %s206_s15, 4  ;;  %s26_s19 = sshll.u32 %s244_s1, 4  ;;  %s19_s16 = int_to_ptr.vmem [resolvable:$true] %s18_s16  ;;  %s27_s19 = int_to_ptr.hbm [resolvable:$true] %s26_s19 }
   0x4   :  { %21 = dma.hbm_to_vmem [thread:$0]  %s17_s14, 32, %s19_s16, [#allocation3]  }
   0x5   :  { %s207_s20 = smov [#allocation5]   ;;  %s208_s22 = smov 128  }
   0x6   :  { %s28_s21 = sshll.u32 %s207_s20, 4  ;;  %s209_s23 = smov 8   ;;  %s29_s21 = int_to_ptr.vmem [resolvable:$true] %s28_s21 }
   0x7   :  { %34 = dma.hbm_to_vmem [thread:$0]  %s27_s19, 256, %s29_s21, [#allocation6], %s208_s22, %s208_s22, %s209_s23  }
   0x8   :  { %200 = dma.done.wait [#allocation3], 32  }
   0x9   :  { %201 = vsyncadd [#allocation3], 4294967264 }
   0xa   :  { %202 = dma.done.wait [#allocation6], 256  }
   0xb   :  { %203 = vsyncadd [#allocation6], 4294967040  ;;  %v67_v0 = vld [vmem:[#allocation5 + $0x8] sm:$0xff]  ;;  %v66_v1 = vld [vmem:[#allocation5] sm:$0xff]  ;;  %vm72_vm4 = vcmask 130048   ;;  %s210_s24 = smov [#allocation7]  }
   0xc   :  { %v45_v2 = vld [vmem:[#allocation2] sm:$0x3]  ;;  %90 = vmatpush.msra.mxu0 %v67_v0  ;;  %s103_s25 = sshll.u32 %s210_s24, 4  ;;  %s105_s28 = sshll.u32 %s246_s3, 4  ;;  %vm96_vm5 = vcmask 517120   ;;  %s104_s25 = int_to_ptr.vmem [resolvable:$true] %s103_s25  ;;  %s106_s28 = int_to_ptr.hbm [resolvable:$true] %s105_s28 }
   0xd   :  { %v116_v3 = vmul.f32 -1.442695, %v45_v2  ;;  %v123_v17 = vld [vmem:[%s245_s2] ss:$0 sm:$0xff] }
   0xe   :  { %91 = vmatpush.msra.mxu0 %v66_v1 }
   0xf   :  { %124 = vpow2.f32 %v116_v3 }
  0x15   :  { %v125_v4 = vpop.eup %124 }
  0x16   :  { %v49_v5 = vadd.f32 1.0, %v125_v4 }
  0x18   :  { %126 = vrcp.f32 %v49_v5  ;;  %v61_v8 = vand.u32 2147483648, %v49_v5  ;;  %vm55_vm0 = vweird.f32 %v49_v5  ;;  %v59_v10 = vand.u32 2147483647, %v49_v5 }
  0x1a   :  { %v62_v12 = vor.u32 1.1754944e-38, %v61_v8  ;;  %vm60_vm3 = vcmp.eq.f32.partialorder %v59_v10, 8.507059e+37 }
  0x1e   :  { %v127_v6 = vpop.eup %126 }
  0x1f   :  { %v51_v7 = vmul.f32 %v127_v6, %v49_v5  ;;  %vm56_vm1 = vweird.f32 %v127_v6 }
  0x20   :  { %vm57_vm2 = vmor %vm55_vm0, %vm56_vm1 }
  0x21   :  { %v52_v9 = vsub.f32 1.0, %v51_v7 }
  0x23   :  { %v53_v11 = vmul.f32 %v127_v6, %v52_v9 }
  0x25   :  { %v54_v13 = vadd.f32 %v127_v6, %v53_v11 }
  0x27   :  { %v58_v14 = vsel %vm57_vm2, %v127_v6, %v54_v13 }
  0x28   :  { %v63_v15 = vsel %vm60_vm3, %v62_v12, %v58_v14 }
  0x29   :  { %v65_v16 = vmul.f32 %v63_v15, %v45_v2 }
  0x2b   :  { %117 = vmatmul.msk.f32.vlgmr.msra.gmra.mxu0 %vm72_vm4, %v65_v16 }
  0xa8   :  { %v93_v18 = vpop.f32.mrf.mxu0 }
  0xa9   :  { %v94_v19 = vadd.f32 %v123_v17, %v93_v18 }
  0xab   :  { %97 = vst.msk [vmem:[#allocation7] sm:$0x3] %vm96_vm5, %v94_v19 }
  0xac   :  { %108 = dma.vmem_to_hbm [thread:$0]  %s104_s25, 32, %s106_s28, [#allocation4]  }
  0xad   :  { %204 = dma.done.wait [#allocation4], 32  }
  0xae   :  { %205 = vsyncadd [#allocation4], 4294967264 }
  0xaf   :  { %113 = vsyncpa [#allocation3], 1 }
  0xb0   :  { %114 = vsyncpa [#allocation6], 1 }
  0xb1   :  { %115 = vsyncpa [#allocation4], 1 }

</bundles_post_ra>
